<compile_context>
chip_gen: v7x
topology: tpu7x:2x2x1
jax: 0.10.0
libtpu: 0.0.40
codegen_flags: <defaults>
</compile_context>

<pallas_src>
import math

import jax
import jax.numpy as jnp
from jax.experimental import pallas as pl
from jax.experimental.pallas import tpu as pltpu


def _copy_kernel(x_ref, o_ref):
    # Identity copy of the current tile (the only "compute" of a view op).
    o_ref[...] = x_ref[...]


def _normalize_size(size):
    """Accept an int, a tuple/list of ints, or a torch.Size-like object."""
    if isinstance(size, int):
        return (size,)
    return tuple(int(s) for s in size)


def _resolve_size(numel, size):
    """Mimic torch.view's handling of a single -1 dimension."""
    size = _normalize_size(size)
    if size.count(-1) > 1:
        raise ValueError("only one dimension can be inferred")
    if -1 in size:
        known = 1
        for s in size:
            if s != -1:
                known *= s
        if known == 0 or numel % known != 0:
            raise ValueError(f"shape {size} is invalid for input of size {numel}")
        size = tuple(numel // known if s == -1 else s for s in size)
    if math.prod(size) != numel:
        raise ValueError(f"shape {size} is invalid for input of size {numel}")
    return size


def _choose_layout(numel, itemsize):
    """Pick a lane-dense 2-D layout and a ~4 MiB row block for the copy."""
    LANE = 128
    MAX_LANES = 8192
    # Widest lane dim that is a multiple of 128 and divides numel exactly
    # (no padding, unmasked full-width stores).
    lanes = LANE
    while lanes * 2 <= MAX_LANES and numel % (lanes * 2) == 0:
        lanes *= 2
    rows = numel // lanes

    # Native sublane granularity: f32 -> 8, bf16 -> 16, int8/fp8 -> 32.
    sub = max(8, 32 // max(1, itemsize))

    # ~4 MiB per block buffer: in+out double buffering (4 buffers) stays well
    # inside the scoped VMEM limit on v5e/v6e/v7x while amortizing per-step
    # grid overhead.
    target_rows = max(1, (4 * 1024 * 1024) // (lanes * itemsize))
    if rows <= target_rows:
        # Single block along rows — a full-dim block is always layout-legal.
        return rows, lanes, rows

    row_block = max(sub, (target_rows // sub) * sub)
    # Prefer a block that divides rows exactly (no masked boundary block).
    cand = row_block
    while cand >= sub:
        if rows % cand == 0:
            return rows, lanes, cand
        cand -= sub
    # No clean divisor: keep the big block; Pallas masks the ragged last block.
    return rows, lanes, row_block


def pallas_view(x, size):
    """Equivalent of `torch.Tensor.view(size)`; copy done in Pallas."""
    numel = x.size
    out_shape = _resolve_size(numel, size)

    if numel == 0 or numel % 128 != 0:
        # A view is metadata-only.  For ragged element counts, skip the copy
        # instead of paying pad + slice HBM traffic (2-3x extra bytes moved).
        return jnp.reshape(x, out_shape)

    itemsize = jnp.dtype(x.dtype).itemsize
    rows, lanes, row_block = _choose_layout(numel, itemsize)

    # Metadata-only reshape to the lane-dense slab (contiguous row-major).
    flat2d = x.reshape(rows, lanes)

    out2d = pl.pallas_call(
        _copy_kernel,
        out_shape=jax.ShapeDtypeStruct((rows, lanes), x.dtype),
        grid_spec=pltpu.PrefetchScalarGridSpec(
            num_scalar_prefetch=0,
            grid=(pl.cdiv(rows, row_block),),
            in_specs=[pl.BlockSpec((row_block, lanes), lambda i: (i, 0))],
            out_specs=pl.BlockSpec((row_block, lanes), lambda i: (i, 0)),
        ),
        compiler_params=pltpu.CompilerParams(
            dimension_semantics=("parallel",),
            # Explicit scoped-VMEM budget: 4 buffers x ~4 MiB blocks fit with
            # headroom on v5e (default 16 MiB would be tight), v6e, and v7x
            # (64 MiB physical).
            vmem_limit_bytes=32 * 1024 * 1024,
        ),
    )(flat2d)

    # Apply the requested view shape (metadata only, no extra copy).
    return out2d.reshape(out_shape)


class View:
    """Drop-in analogue of the PyTorch View module."""

    def __init__(self, size):
        self.size = size

    def __call__(self, tensor):
        return pallas_view(tensor, self.size)


if __name__ == "__main__":
    key = jax.random.PRNGKey(0)
    # NCHW input, small shapes: batch=2, channels=4, spatial=16x16.
    x = jax.random.normal(key, (2, 4, 16, 16), dtype=jnp.float32)

    # View(size=(2, -1)) — the typical "flatten before classifier" use.
    view = View((2, -1))
    y = view(x)
    y = jax.block_until_ready(y)

    # Check against pure-JAX reference (torch .view == row-major reshape).
    y_ref = x.reshape(2, -1)
    assert y.shape == y_ref.shape == (2, 4 * 16 * 16)
    assert y.dtype == x.dtype
    assert bool(jnp.allclose(y, y_ref))

    # Also exercise a bf16 case and a -1-free case to cover the layout picker.
    xb = jax.random.normal(jax.random.PRNGKey(1), (2, 4, 16, 16), dtype=jnp.bfloat16)
    yb = jax.block_until_ready(View((8, 256))(xb))
    assert yb.shape == (8, 256) and yb.dtype == xb.dtype
    assert bool(jnp.all(yb == xb.reshape(8, 256)))

    print("KERNEL_OK")
</pallas_src>

<mosaic_0001>
module attributes {stable_mosaic.version = 11 : i64} {
  func.func @_copy_kernel(%arg0: i32, %arg1: memref<1x2048xf32, #tpu.memory_space<vmem>>, %arg2: memref<1x2048xf32, #tpu.memory_space<vmem>>) attributes {dimension_semantics = [#tpu.dimension_semantics<parallel>], iteration_bounds = array<i64: 1>, scalar_prefetch = 0 : i64, scratch_operands = 0 : i64, tpu.core_type = #tpu.core_type<tc>, window_params = [{transform_indices = @transform_0, window_bounds = array<i64: 1, 2048>}, {transform_indices = @transform_1, window_bounds = array<i64: 1, 2048>}]} {
    %c0 = arith.constant 0 : index
    %c0_0 = arith.constant 0 : index
    %0 = vector.load %arg1[%c0, %c0_0] : memref<1x2048xf32, #tpu.memory_space<vmem>>, vector<1x2048xf32>
    %c0_1 = arith.constant 0 : index
    %c0_2 = arith.constant 0 : index
    %1 = vector.load %arg2[%c0_1, %c0_2] : memref<1x2048xf32, #tpu.memory_space<vmem>>, vector<1x2048xf32>
    tpu.vector_store %arg2[%c0_1, %c0_2], %0 {strides = array<i32>} : memref<1x2048xf32, #tpu.memory_space<vmem>>, vector<1x2048xf32>,
    return
  }
  func.func @transform_0(%arg0: i32) -> (i32, i32) {
    %c0_i32 = arith.constant 0 : i32
    %c0_i32_0 = arith.constant 0 : i32
    return %arg0, %c0_i32 : i32, i32
  }
  func.func @transform_1(%arg0: i32) -> (i32, i32) {
    %c0_i32 = arith.constant 0 : i32
    %c0_i32_0 = arith.constant 0 : i32
    return %arg0, %c0_i32 : i32, i32
  }
}

</mosaic_0001>

<bundles_post_ra>
// kernel: tpu_custom_call.1
= control target key start
LH: loop header
LB: loop body
LE: loop exit
PB: predicated region body
PF: predicated region fallthrough
CT: control target
= control target key end

     0   :  { %6 = vsyncpa [#allocation3], 0  ;;  %s126_s0 = inlined_call_operand.hbm [shape: f32[1,2048], index: 0, kind: input, shape index: {}]   ;;  %s127_s1 = inlined_call_operand.hbm [shape: f32[1,2048], index: 1, kind: output, shape index: {}]  }
   0x1   :  { %7 = vsyncpa [#allocation4], 0  ;;  %s90_s6 = smov [#allocation2]   ;;  %s42_s10 = scalar_lea.hbm %s126_s0, 256 }
   0x2   :  { %s14_s7 = sshll.u32 %s90_s6, 4  ;;  %p43_p0 = scmp.ne.s32.totalorder %s126_s0, %s42_s10  ;;  %s15_s7 = int_to_ptr.vmem [resolvable:$true] %s14_s7 }
   0x3   :  { %p46_p1 = scmp.lt.u32.totalorder %s42_s10, %s126_s0 }
   0x5   :  { %p48_p2 = pnand %p46_p1, %p43_p0 }
   0x7   :  { %51 = shalt.err (!%p48_p2)
}
   0x8   :  { %s52_s15 = scalar_lea.vmem %s15_s7, 256  ;;  %p57_p4 = scmp.lt.s32.totalorder %s15_s7, %s15_s7 }
   0x9   :  { %p53_p3 = scmp.ne.s32.totalorder %s15_s7, %s52_s15  ;;  %p58_p5 = scmp.lt.s32.totalorder %s52_s15, %s52_s15 }
   0xb   :  { %p59_p6 = por %p58_p5, %p57_p4 }
   0xd   :  { %p60_p7 = pnand %p59_p6, %p53_p3 }
   0xf   :  { %63 = shalt.err (!%p60_p7)
}
  0x10   :  { %17 = dma.hbm_to_vmem [thread:$0]  %s126_s0, 256, %s15_s7, [#allocation3]  }
  0x11   :  { %86 = dma.done.wait [#allocation3], 256  }
  0x12   :  { %87 = vsyncadd [#allocation3], 4294967040  ;;  %s91_s18 = smov [#allocation5]   ;;  %v21_v0 = vld [vmem:[#allocation2] sm:$0xff]  ;;  %v22_v1 = vld [vmem:[#allocation2 + $0x8] sm:$0xff] }
  0x13   :  { %s31_s19 = sshll.u32 %s91_s18, 4  ;;  %23 = vst [vmem:[#allocation5] sm:$0xff] %v21_v0  ;;  %24 = vst [vmem:[#allocation5 + $0x8] sm:$0xff] %v22_v1  ;;  %s32_s19 = int_to_ptr.vmem [resolvable:$true] %s31_s19 }
  0x14   :  { %s64_s20 = scalar_lea.vmem %s32_s19, 256  ;;  %p69_p9 = scmp.lt.s32.totalorder %s32_s19, %s32_s19 }
  0x15   :  { %p65_p8 = scmp.ne.s32.totalorder %s32_s19, %s64_s20  ;;  %p70_p10 = scmp.lt.s32.totalorder %s64_s20, %s64_s20 }
  0x17   :  { %p71_p11 = por %p70_p10, %p69_p9 }
  0x19   :  { %p72_p12 = pnand %p71_p11, %p65_p8 }
  0x1b   :  { %75 = shalt.err (!%p72_p12)
}
  0x1c   :  { %s76_s0 = scalar_lea.hbm %s127_s1, 256 }
  0x1d   :  { %p77_p13 = scmp.ne.s32.totalorder %s127_s1, %s76_s0  ;;  %p80_p0 = scmp.lt.u32.totalorder %s76_s0, %s127_s1 }
  0x1f   :  { %p82_p1 = pnand %p80_p0, %p77_p13 }
  0x21   :  { %85 = shalt.err (!%p82_p1)
}
  0x22   :  { %34 = dma.vmem_to_hbm [thread:$0]  %s32_s19, 256, %s127_s1, [#allocation4]  }
  0x23   :  { %88 = dma.done.wait [#allocation4], 256  }
  0x24   :  { %89 = vsyncadd [#allocation4], 4294967040 }
  0x25   :  { %38 = vsyncpa [#allocation3], 1 }
  0x26   :  { %39 = vsyncpa [#allocation4], 1 }

</bundles_post_ra>
